<compile_context>
chip_gen: v7x
topology: tpu7x:2x2x1
jax: 0.10.0
libtpu: 0.0.40
codegen_flags: <defaults>
</compile_context>

<pallas_src>
import functools
import math

import jax
import jax.numpy as jnp
from jax.experimental import pallas as pl
from jax.experimental.pallas import tpu as pltpu

LAYER_SIZES = (3, 3, 3, 3, 3, 1)
_SUBLANE = 8    # f32 sublane tile
_LANE = 128     # lane tile
_GELU_C = math.sqrt(2.0 / math.pi)


def _gelu_tanh(x):
    # 0.5 * x * (1 + tanh(sqrt(2/pi) * (x + 0.044715 * x^3)))
    return 0.5 * x * (1.0 + jnp.tanh(_GELU_C * (x + 0.044715 * (x * x * x))))


def _example_dnn_kernel(*refs, layer_sizes, use_shortcut):
    # refs = (x, w1, b1, w2, b2, ..., w5, b5, out); all padded to (8k, 128m).
    x_ref = refs[0]
    out_ref = refs[-1]
    param_refs = refs[1:-1]
    n_layers = len(param_refs) // 2

    h = x_ref[...]
    for i in range(n_layers):
        w = param_refs[2 * i][...]        # (F, F) zero-padded weight
        b = param_refs[2 * i + 1][...]    # (1, F) zero-padded bias
        y = _gelu_tanh(jnp.dot(h, w, preferred_element_type=jnp.float32) + b)
        # Torch's `x.shape == layer_output.shape` test must use the *logical*
        # dims (padding makes every padded shape equal).
        if use_shortcut and layer_sizes[i] == layer_sizes[i + 1]:
            h = h + y
        else:
            h = y
    out_ref[...] = h.astype(out_ref.dtype)


def _round_up(n, m):
    return ((n + m - 1) // m) * m


def _pad_to(a, shape):
    return jnp.pad(a, [(0, t - s) for s, t in zip(a.shape, shape)])


def example_dnn_forward(x, params, *, use_shortcut=True):
    """Forward pass of ExampleDNN as a single fused Pallas TPU kernel.

    x:      (B, layer_sizes[0]) float32
    params: list of (weight (in, out), bias (out,)) per layer.
    """
    layer_sizes = (x.shape[1],) + tuple(w.shape[1] for w, _ in params)
    B = x.shape[0]
    Bp = _round_up(B, _SUBLANE)
    Fp = _round_up(max(layer_sizes), _LANE)

    flat = [_pad_to(x, (Bp, Fp))]
    for w, b in params:
        flat.append(_pad_to(w, (Fp, Fp)))
        flat.append(_pad_to(b.reshape(1, -1), (1, Fp)))

    kernel = functools.partial(
        _example_dnn_kernel,
        layer_sizes=layer_sizes,
        use_shortcut=use_shortcut,
    )
    vmem = pl.BlockSpec(memory_space=pltpu.MemorySpace.VMEM)
    out_padded = pl.pallas_call(
        kernel,
        out_shape=jax.ShapeDtypeStruct((Bp, Fp), x.dtype),
        in_specs=[vmem] * len(flat),
        out_specs=vmem,
    )(*flat)
    return out_padded[:B, : layer_sizes[-1]]


def init_params(key, layer_sizes):
    """Deterministic PyTorch-style U(-1/sqrt(fan_in), +1/sqrt(fan_in)) init."""
    params = []
    for fan_in, fan_out in zip(layer_sizes[:-1], layer_sizes[1:]):
        key, wk, bk = jax.random.split(key, 3)
        bound = 1.0 / math.sqrt(fan_in)
        w = jax.random.uniform(wk, (fan_in, fan_out), jnp.float32, -bound, bound)
        b = jax.random.uniform(bk, (fan_out,), jnp.float32, -bound, bound)
        params.append((w, b))
    return params


def example_dnn_ref(x, params, use_shortcut=True):
    """Pure-JAX reference matching the PyTorch forward pass."""
    h = x
    for w, b in params:
        y = _gelu_tanh(h @ w + b)
        h = h + y if (use_shortcut and y.shape == h.shape) else y
    return h


if __name__ == "__main__":
    key = jax.random.PRNGKey(0)
    xkey, pkey = jax.random.split(key)

    # layer_sizes[0] = 3 input features; small deterministic batch of 2.
    x = jax.random.normal(xkey, (2, LAYER_SIZES[0]), dtype=jnp.float32)
    params = init_params(pkey, LAYER_SIZES)

    y = example_dnn_forward(x, params, use_shortcut=True)
    y = jax.block_until_ready(y)

    y_ref = example_dnn_ref(x, params, use_shortcut=True)
    assert y.shape == (x.shape[0], LAYER_SIZES[-1]) and y.dtype == x.dtype
    assert bool(jnp.allclose(y, y_ref, rtol=1e-4, atol=1e-4))
    print("KERNEL_OK")
</pallas_src>

<mosaic_0001>
module attributes {stable_mosaic.version = 11 : i64} {
  func.func @_example_dnn_kernel(%arg0: memref<8x128xf32, #tpu.memory_space<vmem>>, %arg1: memref<128x128xf32, #tpu.memory_space<vmem>>, %arg2: memref<1x128xf32, #tpu.memory_space<vmem>>, %arg3: memref<128x128xf32, #tpu.memory_space<vmem>>, %arg4: memref<1x128xf32, #tpu.memory_space<vmem>>, %arg5: memref<128x128xf32, #tpu.memory_space<vmem>>, %arg6: memref<1x128xf32, #tpu.memory_space<vmem>>, %arg7: memref<128x128xf32, #tpu.memory_space<vmem>>, %arg8: memref<1x128xf32, #tpu.memory_space<vmem>>, %arg9: memref<128x128xf32, #tpu.memory_space<vmem>>, %arg10: memref<1x128xf32, #tpu.memory_space<vmem>>, %arg11: memref<8x128xf32, #tpu.memory_space<vmem>>) attributes {dimension_semantics = [], scalar_prefetch = 0 : i64, scratch_operands = 0 : i64, tpu.core_type = #tpu.core_type<tc>} {
    %c0 = arith.constant 0 : index
    %c0_0 = arith.constant 0 : index
    %0 = vector.load %arg0[%c0, %c0_0] : memref<8x128xf32, #tpu.memory_space<vmem>>, vector<8x128xf32>
    %c0_1 = arith.constant 0 : index
    %c0_2 = arith.constant 0 : index
    %1 = vector.load %arg1[%c0_1, %c0_2] : memref<128x128xf32, #tpu.memory_space<vmem>>, vector<128x128xf32>
    %c0_3 = arith.constant 0 : index
    %c0_4 = arith.constant 0 : index
    %2 = vector.load %arg2[%c0_3, %c0_4] : memref<1x128xf32, #tpu.memory_space<vmem>>, vector<1x128xf32>
    %cst = arith.constant dense<0.000000e+00> : vector<8x128xf32>
    %3 = tpu.matmul %0, %1, %cst {dimension_numbers = #tpu.dot_dimension_numbers<[1], [0], [0], [1], [0, 0, 1, 1], [], []>} : vector<8x128xf32>, vector<128x128xf32>, vector<8x128xf32> -> vector<8x128xf32>
    %4 = vector.broadcast %2 : vector<1x128xf32> to vector<8x128xf32>
    %5 = arith.addf %3, %4 : vector<8x128xf32>
    %cst_5 = arith.constant 5.000000e-01 : f32
    %6 = vector.broadcast %cst_5 : f32 to vector<8x128xf32>
    %7 = arith.mulf %6, %5 : vector<8x128xf32>
    %8 = arith.mulf %5, %5 : vector<8x128xf32>
    %9 = arith.mulf %8, %5 : vector<8x128xf32>
    %cst_6 = arith.constant 4.471500e-02 : f32
    %10 = vector.broadcast %cst_6 : f32 to vector<8x128xf32>
    %11 = arith.mulf %10, %9 : vector<8x128xf32>
    %12 = arith.addf %5, %11 : vector<8x128xf32>
    %cst_7 = arith.constant 0.797884583 : f32
    %13 = vector.broadcast %cst_7 : f32 to vector<8x128xf32>
    %14 = arith.mulf %13, %12 : vector<8x128xf32>
    %15 = math.tanh %14 : vector<8x128xf32>
    %cst_8 = arith.constant 1.000000e+00 : f32
    %16 = vector.broadcast %cst_8 : f32 to vector<8x128xf32>
    %17 = arith.addf %16, %15 : vector<8x128xf32>
    %18 = arith.mulf %7, %17 : vector<8x128xf32>
    %19 = arith.addf %0, %18 : vector<8x128xf32>
    %c0_9 = arith.constant 0 : index
    %c0_10 = arith.constant 0 : index
    %20 = vector.load %arg3[%c0_9, %c0_10] : memref<128x128xf32, #tpu.memory_space<vmem>>, vector<128x128xf32>
    %c0_11 = arith.constant 0 : index
    %c0_12 = arith.constant 0 : index
    %21 = vector.load %arg4[%c0_11, %c0_12] : memref<1x128xf32, #tpu.memory_space<vmem>>, vector<1x128xf32>
    %cst_13 = arith.constant dense<0.000000e+00> : vector<8x128xf32>
    %22 = tpu.matmul %19, %20, %cst_13 {dimension_numbers = #tpu.dot_dimension_numbers<[1], [0], [0], [1], [0, 0, 1, 1], [], []>} : vector<8x128xf32>, vector<128x128xf32>, vector<8x128xf32> -> vector<8x128xf32>
    %23 = vector.broadcast %21 : vector<1x128xf32> to vector<8x128xf32>
    %24 = arith.addf %22, %23 : vector<8x128xf32>
    %cst_14 = arith.constant 5.000000e-01 : f32
    %25 = vector.broadcast %cst_14 : f32 to vector<8x128xf32>
    %26 = arith.mulf %25, %24 : vector<8x128xf32>
    %27 = arith.mulf %24, %24 : vector<8x128xf32>
    %28 = arith.mulf %27, %24 : vector<8x128xf32>
    %cst_15 = arith.constant 4.471500e-02 : f32
    %29 = vector.broadcast %cst_15 : f32 to vector<8x128xf32>
    %30 = arith.mulf %29, %28 : vector<8x128xf32>
    %31 = arith.addf %24, %30 : vector<8x128xf32>
    %cst_16 = arith.constant 0.797884583 : f32
    %32 = vector.broadcast %cst_16 : f32 to vector<8x128xf32>
    %33 = arith.mulf %32, %31 : vector<8x128xf32>
    %34 = math.tanh %33 : vector<8x128xf32>
    %cst_17 = arith.constant 1.000000e+00 : f32
    %35 = vector.broadcast %cst_17 : f32 to vector<8x128xf32>
    %36 = arith.addf %35, %34 : vector<8x128xf32>
    %37 = arith.mulf %26, %36 : vector<8x128xf32>
    %38 = arith.addf %19, %37 : vector<8x128xf32>
    %c0_18 = arith.constant 0 : index
    %c0_19 = arith.constant 0 : index
    %39 = vector.load %arg5[%c0_18, %c0_19] : memref<128x128xf32, #tpu.memory_space<vmem>>, vector<128x128xf32>
    %c0_20 = arith.constant 0 : index
    %c0_21 = arith.constant 0 : index
    %40 = vector.load %arg6[%c0_20, %c0_21] : memref<1x128xf32, #tpu.memory_space<vmem>>, vector<1x128xf32>
    %cst_22 = arith.constant dense<0.000000e+00> : vector<8x128xf32>
    %41 = tpu.matmul %38, %39, %cst_22 {dimension_numbers = #tpu.dot_dimension_numbers<[1], [0], [0], [1], [0, 0, 1, 1], [], []>} : vector<8x128xf32>, vector<128x128xf32>, vector<8x128xf32> -> vector<8x128xf32>
    %42 = vector.broadcast %40 : vector<1x128xf32> to vector<8x128xf32>
    %43 = arith.addf %41, %42 : vector<8x128xf32>
    %cst_23 = arith.constant 5.000000e-01 : f32
    %44 = vector.broadcast %cst_23 : f32 to vector<8x128xf32>
    %45 = arith.mulf %44, %43 : vector<8x128xf32>
    %46 = arith.mulf %43, %43 : vector<8x128xf32>
    %47 = arith.mulf %46, %43 : vector<8x128xf32>
    %cst_24 = arith.constant 4.471500e-02 : f32
    %48 = vector.broadcast %cst_24 : f32 to vector<8x128xf32>
    %49 = arith.mulf %48, %47 : vector<8x128xf32>
    %50 = arith.addf %43, %49 : vector<8x128xf32>
    %cst_25 = arith.constant 0.797884583 : f32
    %51 = vector.broadcast %cst_25 : f32 to vector<8x128xf32>
    %52 = arith.mulf %51, %50 : vector<8x128xf32>
    %53 = math.tanh %52 : vector<8x128xf32>
    %cst_26 = arith.constant 1.000000e+00 : f32
    %54 = vector.broadcast %cst_26 : f32 to vector<8x128xf32>
    %55 = arith.addf %54, %53 : vector<8x128xf32>
    %56 = arith.mulf %45, %55 : vector<8x128xf32>
    %57 = arith.addf %38, %56 : vector<8x128xf32>
    %c0_27 = arith.constant 0 : index
    %c0_28 = arith.constant 0 : index
    %58 = vector.load %arg7[%c0_27, %c0_28] : memref<128x128xf32, #tpu.memory_space<vmem>>, vector<128x128xf32>
    %c0_29 = arith.constant 0 : index
    %c0_30 = arith.constant 0 : index
    %59 = vector.load %arg8[%c0_29, %c0_30] : memref<1x128xf32, #tpu.memory_space<vmem>>, vector<1x128xf32>
    %cst_31 = arith.constant dense<0.000000e+00> : vector<8x128xf32>
    %60 = tpu.matmul %57, %58, %cst_31 {dimension_numbers = #tpu.dot_dimension_numbers<[1], [0], [0], [1], [0, 0, 1, 1], [], []>} : vector<8x128xf32>, vector<128x128xf32>, vector<8x128xf32> -> vector<8x128xf32>
    %61 = vector.broadcast %59 : vector<1x128xf32> to vector<8x128xf32>
    %62 = arith.addf %60, %61 : vector<8x128xf32>
    %cst_32 = arith.constant 5.000000e-01 : f32
    %63 = vector.broadcast %cst_32 : f32 to vector<8x128xf32>
    %64 = arith.mulf %63, %62 : vector<8x128xf32>
    %65 = arith.mulf %62, %62 : vector<8x128xf32>
    %66 = arith.mulf %65, %62 : vector<8x128xf32>
    %cst_33 = arith.constant 4.471500e-02 : f32
    %67 = vector.broadcast %cst_33 : f32 to vector<8x128xf32>
    %68 = arith.mulf %67, %66 : vector<8x128xf32>
    %69 = arith.addf %62, %68 : vector<8x128xf32>
    %cst_34 = arith.constant 0.797884583 : f32
    %70 = vector.broadcast %cst_34 : f32 to vector<8x128xf32>
    %71 = arith.mulf %70, %69 : vector<8x128xf32>
    %72 = math.tanh %71 : vector<8x128xf32>
    %cst_35 = arith.constant 1.000000e+00 : f32
    %73 = vector.broadcast %cst_35 : f32 to vector<8x128xf32>
    %74 = arith.addf %73, %72 : vector<8x128xf32>
    %75 = arith.mulf %64, %74 : vector<8x128xf32>
    %76 = arith.addf %57, %75 : vector<8x128xf32>
    %c0_36 = arith.constant 0 : index
    %c0_37 = arith.constant 0 : index
    %77 = vector.load %arg9[%c0_36, %c0_37] : memref<128x128xf32, #tpu.memory_space<vmem>>, vector<128x128xf32>
    %c0_38 = arith.constant 0 : index
    %c0_39 = arith.constant 0 : index
    %78 = vector.load %arg10[%c0_38, %c0_39] : memref<1x128xf32, #tpu.memory_space<vmem>>, vector<1x128xf32>
    %cst_40 = arith.constant dense<0.000000e+00> : vector<8x128xf32>
    %79 = tpu.matmul %76, %77, %cst_40 {dimension_numbers = #tpu.dot_dimension_numbers<[1], [0], [0], [1], [0, 0, 1, 1], [], []>} : vector<8x128xf32>, vector<128x128xf32>, vector<8x128xf32> -> vector<8x128xf32>
    %80 = vector.broadcast %78 : vector<1x128xf32> to vector<8x128xf32>
    %81 = arith.addf %79, %80 : vector<8x128xf32>
    %cst_41 = arith.constant 5.000000e-01 : f32
    %82 = vector.broadcast %cst_41 : f32 to vector<8x128xf32>
    %83 = arith.mulf %82, %81 : vector<8x128xf32>
    %84 = arith.mulf %81, %81 : vector<8x128xf32>
    %85 = arith.mulf %84, %81 : vector<8x128xf32>
    %cst_42 = arith.constant 4.471500e-02 : f32
    %86 = vector.broadcast %cst_42 : f32 to vector<8x128xf32>
    %87 = arith.mulf %86, %85 : vector<8x128xf32>
    %88 = arith.addf %81, %87 : vector<8x128xf32>
    %cst_43 = arith.constant 0.797884583 : f32
    %89 = vector.broadcast %cst_43 : f32 to vector<8x128xf32>
    %90 = arith.mulf %89, %88 : vector<8x128xf32>
    %91 = math.tanh %90 : vector<8x128xf32>
    %cst_44 = arith.constant 1.000000e+00 : f32
    %92 = vector.broadcast %cst_44 : f32 to vector<8x128xf32>
    %93 = arith.addf %92, %91 : vector<8x128xf32>
    %94 = arith.mulf %83, %93 : vector<8x128xf32>
    %c0_45 = arith.constant 0 : index
    %c0_46 = arith.constant 0 : index
    %95 = vector.load %arg11[%c0_45, %c0_46] : memref<8x128xf32, #tpu.memory_space<vmem>>, vector<8x128xf32>
    tpu.vector_store %arg11[%c0_45, %c0_46], %94 {strides = array<i32>} : memref<8x128xf32, #tpu.memory_space<vmem>>, vector<8x128xf32>,
    return
  }
}

</mosaic_0001>

<bundles_post_ra>
// kernel: tpu_custom_call.1
= control target key start
LH: loop header
LB: loop body
LE: loop exit
PB: predicated region body
PF: predicated region fallthrough
CT: control target
= control target key end

     0   :  { %16 = vsyncpa [#allocation3], 0  ;;  %s1460_s0 = inlined_call_operand.hbm [shape: f32[8,128], index: 0, kind: input, shape index: {}]   ;;  %s1461_s1 = inlined_call_operand.hbm [shape: f32[128,128], index: 1, kind: input, shape index: {}]   ;;  %s1462_s2 = inlined_call_operand.vmem [shape: f32[1,128], index: 2, kind: input, shape index: {}]   ;;  %s1463_s3 = inlined_call_operand.hbm [shape: f32[128,128], index: 3, kind: input, shape index: {}]   ;;  %s1464_s4 = inlined_call_operand.vmem [shape: f32[1,128], index: 4, kind: input, shape index: {}]   ;;  %s1465_s5 = inlined_call_operand.hbm [shape: f32[128,128], index: 5, kind: input, shape index: {}]   ;;  %s1466_s6 = inlined_call_operand.vmem [shape: f32[1,128], index: 6, kind: input, shape index: {}]   ;;  %s1467_s7 = inlined_call_operand.hbm [shape: f32[128,128], index: 7, kind: input, shape index: {}]   ;;  %s1468_s8 = inlined_call_operand.vmem [shape: f32[1,128], index: 8, kind: input, shape index: {}]   ;;  %s1469_s9 = inlined_call_operand.hbm [shape: f32[128,128], index: 9, kind: input, shape index: {}]   ;;  %s1470_s10 = inlined_call_operand.vmem [shape: f32[1,128], index: 10, kind: input, shape index: {}]   ;;  %s1471_s11 = inlined_call_operand.hbm [shape: f32[8,128], index: 11, kind: output, shape index: {}]  }
   0x1   :  { %17 = vsyncpa [#allocation6], 0 }
   0x2   :  { %18 = vsyncpa [#allocation9], 0 }
   0x3   :  { %19 = vsyncpa [#allocation12], 0 }
   0x4   :  { %20 = vsyncpa [#allocation4], 0  ;;  %s1224_s17 = smov [#allocation5]   ;;  %s1060_s21 = scalar_lea.hbm %s1461_s1, 2048 }
   0x5   :  { %s36_s18 = sshll.u32 %s1224_s17, 4  ;;  %p1061_p0 = scmp.ne.s32.totalorder %s1461_s1, %s1060_s21  ;;  %s37_s18 = int_to_ptr.vmem [resolvable:$true] %s36_s18 }
   0x6   :  { %p1064_p1 = scmp.lt.u32.totalorder %s1060_s21, %s1461_s1 }
   0x8   :  { %p1066_p2 = pnand %p1064_p1, %p1061_p0 }
   0xa   :  { %1069 = shalt.err (!%p1066_p2)
}
   0xb   :  { %s1070_s26 = scalar_lea.vmem %s37_s18, 2048  ;;  %p1075_p4 = scmp.lt.s32.totalorder %s37_s18, %s37_s18 }
   0xc   :  { %p1071_p3 = scmp.ne.s32.totalorder %s37_s18, %s1070_s26  ;;  %p1076_p5 = scmp.lt.s32.totalorder %s1070_s26, %s1070_s26 }
   0xe   :  { %p1077_p6 = por %p1076_p5, %p1075_p4 }
  0x10   :  { %p1078_p7 = pnand %p1077_p6, %p1071_p3 }
  0x12   :  { %1081 = shalt.err (!%p1078_p7)
}
  0x13   :  { %s1225_s27 = smov 128   ;;  %s1226_s28 = smov 8  }
  0x14   :  { %42 = dma.hbm_to_vmem [thread:$0]  %s1461_s1, 2048, %s37_s18, [#allocation6], %s1225_s27, %s1225_s27, %s1226_s28  }
  0x15   :  { %s1227_s12 = smov [#allocation8]   ;;  %s1228_s14 = smov [#allocation2]  }
  0x16   :  { %s64_s13 = sshll.u32 %s1227_s12, 4  ;;  %s27_s15 = sshll.u32 %s1228_s14, 4  ;;  %s65_s13 = int_to_ptr.vmem [resolvable:$true] %s64_s13  ;;  %s28_s15 = int_to_ptr.vmem [resolvable:$true] %s27_s15 }
  0x17   :  { %s1082_s19 = scalar_lea.hbm %s1465_s5, 2048 }
  0x18   :  { %p1083_p8 = scmp.ne.s32.totalorder %s1465_s5, %s1082_s19  ;;  %p1086_p9 = scmp.lt.u32.totalorder %s1082_s19, %s1465_s5 }
  0x1a   :  { %p1088_p10 = pnand %p1086_p9, %p1083_p8 }
  0x1c   :  { %1091 = shalt.err (!%p1088_p10)
}
  0x1d   :  { %s1092_s1 = scalar_lea.vmem %s65_s13, 2048  ;;  %p1097_p12 = scmp.lt.s32.totalorder %s65_s13, %s65_s13 }
  0x1e   :  { %p1093_p11 = scmp.ne.s32.totalorder %s65_s13, %s1092_s1  ;;  %p1098_p13 = scmp.lt.s32.totalorder %s1092_s1, %s1092_s1 }
  0x20   :  { %p1099_p0 = por %p1098_p13, %p1097_p12 }
  0x22   :  { %p1100_p1 = pnand %p1099_p0, %p1093_p11 }
  0x24   :  { %1103 = shalt.err (!%p1100_p1)
}
  0x25   :  { %70 = dma.hbm_to_vmem [thread:$0]  %s1465_s5, 2048, %s65_s13, [#allocation9], %s1225_s27, %s1225_s27, %s1226_s28  }
  0x26   :  { %s1104_s29 = scalar_lea.hbm %s1460_s0, 128 }
  0x27   :  { %p1105_p2 = scmp.ne.s32.totalorder %s1460_s0, %s1104_s29  ;;  %p1108_p3 = scmp.lt.u32.totalorder %s1104_s29, %s1460_s0 }
  0x29   :  { %p1110_p4 = pnand %p1108_p3, %p1105_p2 }
  0x2b   :  { %1113 = shalt.err (!%p1110_p4)
}
  0x2c   :  { %s1114_s17 = scalar_lea.vmem %s28_s15, 128  ;;  %p1119_p6 = scmp.lt.s32.totalorder %s28_s15, %s28_s15 }
  0x2d   :  { %p1115_p5 = scmp.ne.s32.totalorder %s28_s15, %s1114_s17  ;;  %p1120_p7 = scmp.lt.s32.totalorder %s1114_s17, %s1114_s17 }
  0x2f   :  { %p1121_p8 = por %p1120_p7, %p1119_p6 }
  0x31   :  { %p1122_p9 = pnand %p1121_p8, %p1115_p5 }
  0x33   :  { %1125 = shalt.err (!%p1122_p9)
}
  0x34   :  { %30 = dma.hbm_to_vmem [thread:$0]  %s1460_s0, 128, %s28_s15, [#allocation3]  }
  0x35   :  { %s1229_s19 = smov [#allocation7]   ;;  %s1230_s21 = smov [#allocation10]  }
  0x36   :  { %s50_s20 = sshll.u32 %s1229_s19, 4  ;;  %s78_s22 = sshll.u32 %s1230_s21, 4  ;;  %s51_s20 = int_to_ptr.vmem [resolvable:$true] %s50_s20  ;;  %s79_s22 = int_to_ptr.vmem [resolvable:$true] %s78_s22 }
  0x37   :  { %s1126_s18 = scalar_lea.hbm %s1463_s3, 2048 }
  0x38   :  { %p1127_p10 = scmp.ne.s32.totalorder %s1463_s3, %s1126_s18  ;;  %p1130_p11 = scmp.lt.u32.totalorder %s1126_s18, %s1463_s3 }
  0x3a   :  { %p1132_p12 = pnand %p1130_p11, %p1127_p10 }
  0x3c   :  { %1135 = shalt.err (!%p1132_p12)
}
  0x3d   :  { %s1136_s0 = scalar_lea.vmem %s51_s20, 2048  ;;  %p1141_p0 = scmp.lt.s32.totalorder %s51_s20, %s51_s20 }
  0x3e   :  { %p1137_p13 = scmp.ne.s32.totalorder %s51_s20, %s1136_s0  ;;  %p1142_p1 = scmp.lt.s32.totalorder %s1136_s0, %s1136_s0 }
  0x40   :  { %p1143_p2 = por %p1142_p1, %p1141_p0 }
  0x42   :  { %p1144_p3 = pnand %p1143_p2, %p1137_p13 }
  0x44   :  { %1147 = shalt.err (!%p1144_p3)
}
  0x45   :  { %56 = dma.hbm_to_vmem [thread:$0]  %s1463_s3, 2048, %s51_s20, [#allocation6], %s1225_s27, %s1225_s27, %s1226_s28  }
  0x46   :  { %s1148_s16 = scalar_lea.hbm %s1467_s7, 2048 }
  0x47   :  { %p1149_p4 = scmp.ne.s32.totalorder %s1467_s7, %s1148_s16  ;;  %p1152_p5 = scmp.lt.u32.totalorder %s1148_s16, %s1467_s7 }
  0x49   :  { %p1154_p6 = pnand %p1152_p5, %p1149_p4 }
  0x4b   :  { %1157 = shalt.err (!%p1154_p6)
}
  0x4c   :  { %s1158_s21 = scalar_lea.vmem %s79_s22, 2048  ;;  %p1163_p8 = scmp.lt.s32.totalorder %s79_s22, %s79_s22 }
  0x4d   :  { %p1159_p7 = scmp.ne.s32.totalorder %s79_s22, %s1158_s21  ;;  %p1164_p9 = scmp.lt.s32.totalorder %s1158_s21, %s1158_s21 }
  0x4f   :  { %p1165_p10 = por %p1164_p9, %p1163_p8 }
  0x51   :  { %p1166_p11 = pnand %p1165_p10, %p1159_p7 }
  0x53   :  { %1169 = shalt.err (!%p1166_p11)
}
  0x54   :  { %84 = dma.hbm_to_vmem [thread:$0]  %s1467_s7, 2048, %s79_s22, [#allocation9], %s1225_s27, %s1225_s27, %s1226_s28  }
  0x55   :  { %s1231_s23 = smov [#allocation11]   ;;  %s1170_s25 = scalar_lea.hbm %s1469_s9, 2048 }
  0x56   :  { %s92_s1 = sshll.u32 %s1231_s23, 4  ;;  %p1171_p12 = scmp.ne.s32.totalorder %s1469_s9, %s1170_s25  ;;  %s93_s1 = int_to_ptr.vmem [resolvable:$true] %s92_s1 }
  0x57   :  { %p1174_p13 = scmp.lt.u32.totalorder %s1170_s25, %s1469_s9 }
  0x59   :  { %p1176_p0 = pnand %p1174_p13, %p1171_p12 }
  0x5b   :  { %1179 = shalt.err (!%p1176_p0)
}
  0x5c   :  { %s1180_s30 = scalar_lea.vmem %s93_s1, 2048  ;;  %p1185_p2 = scmp.lt.s32.totalorder %s93_s1, %s93_s1 }
  0x5d   :  { %p1181_p1 = scmp.ne.s32.totalorder %s93_s1, %s1180_s30  ;;  %p1186_p3 = scmp.lt.s32.totalorder %s1180_s30, %s1180_s30 }
  0x5f   :  { %p1187_p4 = por %p1186_p3, %p1185_p2 }
  0x61   :  { %p1188_p5 = pnand %p1187_p4, %p1181_p1 }
  0x63   :  { %1191 = shalt.err (!%p1188_p5)
}
  0x64   :  { %98 = dma.hbm_to_vmem [thread:$0]  %s1469_s9, 2048, %s93_s1, [#allocation12], %s1225_s27, %s1225_s27, %s1226_s28  }
  0x65   :  { %1214 = dma.done.wait [#allocation3], 128  }
  0x66   :  { %1215 = vsyncadd [#allocation3], 4294967168 }
  0x67   :  { %1216 = dma.done.wait [#allocation6], 4096  }
  0x68   :  { %1217 = vsyncadd [#allocation6], 4294963200 }
  0x69   :  { %1218 = dma.done.wait [#allocation9], 4096  }
  0x6a   :  { %1219 = vsyncadd [#allocation9], 4294963200 }
  0x6b   :  { %1220 = dma.done.wait [#allocation12], 2048  }
  0x6c   :  { %1221 = vsyncadd [#allocation12], 4294965248  ;;  %v1232_v0 = vmov 0.0|0.0   ;;  %vm1233_vm0 = vmmov 0   ;;  %v1234_v1 = vmov 0.0   ;;  %v120_v2 = vld [vmem:[#allocation5] sm:$0xff] }
  0x6d   :  { %918 = vmatprep.subr.bf16.mxu0 %v1232_v0  ;;  %775 = vmatprep.mubr.msk.f32.mxu0 %vm1233_vm0, %v1234_v1  ;;  %v121_v3 = vld [vmem:[#allocation5 + $0x8] sm:$0xff]  ;;  %v122_v4 = vld [vmem:[#allocation5 + $0x10] sm:$0xff]  ;;  %v123_v6 = vld [vmem:[#allocation5 + $0x18] sm:$0xff] }
  0x6e   :  { %942 = vmatprep.subr.bf16.mxu1 %v1232_v0  ;;  %810 = vmatprep.mubr.msk.f32.mxu1 %vm1233_vm0, %v1234_v1  ;;  %v919_v5 = vpack.c.bf16 %v121_v3, %v120_v2  ;;  %v922_v7 = vpack.c.bf16 %v123_v6, %v122_v4  ;;  %v124_v8 = vld [vmem:[#allocation5 + $0x20] sm:$0xff]  ;;  %v125_v9 = vld [vmem:[#allocation5 + $0x28] sm:$0xff]  ;;  %v126_v14 = vld [vmem:[#allocation5 + $0x30] sm:$0xff] }
  0x6f   :  { %v223_v10 = vld [vmem:[#allocation7] sm:$0xff]  ;;  %v224_v11 = vld [vmem:[#allocation7 + $0x8] sm:$0xff]  ;;  %v925_v12 = vpack.c.bf16 %v125_v9, %v124_v8  ;;  %v127_v15 = vld [vmem:[#allocation5 + $0x38] sm:$0xff] }
  0x70   :  { %920 = vmatpush3.bf16.msra.mxu0 %v919_v5  ;;  %v943_v13 = vpack.c.bf16 %v224_v11, %v223_v10  ;;  %v928_v16 = vpack.c.bf16 %v127_v15, %v126_v14  ;;  %v128_v17 = vld [vmem:[#allocation5 + $0x40] sm:$0xff]  ;;  %v129_v18 = vld [vmem:[#allocation5 + $0x48] sm:$0xff]  ;;  %v130_v20 = vld [vmem:[#allocation5 + $0x50] sm:$0xff] }
  0x71   :  { %921 = vmatprep.subr.bf16.mxu0 %v1232_v0  ;;  %v931_v19 = vpack.c.bf16 %v129_v18, %v128_v17  ;;  %v131_v21 = vld [vmem:[#allocation5 + $0x58] sm:$0xff]  ;;  %v132_v23 = vld [vmem:[#allocation5 + $0x60] sm:$0xff]  ;;  %v133_v24 = vld [vmem:[#allocation5 + $0x68] sm:$0xff] }
  0x72   :  { %944 = vmatpush3.bf16.msra.mxu1 %v943_v13  ;;  %v934_v22 = vpack.c.bf16 %v131_v21, %v130_v20  ;;  %v937_v25 = vpack.c.bf16 %v133_v24, %v132_v23  ;;  %v134_v26 = vld [vmem:[#allocation5 + $0x70] sm:$0xff]  ;;  %v135_v27 = vld [vmem:[#allocation5 + $0x78] sm:$0xff]  ;;  %v227_v33 = vld [vmem:[#allocation7 + $0x20] sm:$0xff] }
  0x73   :  { %945 = vmatprep.subr.bf16.mxu1 %v1232_v0  ;;  %v940_v28 = vpack.c.bf16 %v135_v27, %v134_v26  ;;  %v119_v29 = vld [vmem:[#allocation2] sm:$0xff]  ;;  %v225_v30 = vld [vmem:[#allocation7 + $0x10] sm:$0xff]  ;;  %v228_v34 = vld [vmem:[#allocation7 + $0x28] sm:$0xff] }
  0x74   :  { %923 = vmatpush3.bf16.msra.mxu0 %v922_v7  ;;  %v226_v31 = vld [vmem:[#allocation7 + $0x18] sm:$0xff]  ;;  %v949_v35 = vpack.c.bf16 %v228_v34, %v227_v33  ;;  %v229_v36 = vld [vmem:[#allocation7 + $0x30] sm:$0xff]  ;;  %v231_v39 = vld [vmem:[#allocation7 + $0x40] sm:$0xff] }
  0x75   :  { %924 = vmatprep.subr.bf16.mxu0 %v1232_v0  ;;  %v946_v32 = vpack.c.bf16 %v226_v31, %v225_v30  ;;  %v230_v37 = vld [vmem:[#allocation7 + $0x38] sm:$0xff]  ;;  %v232_v40 = vld [vmem:[#allocation7 + $0x48] sm:$0xff]  ;;  %v233_v42 = vld [vmem:[#allocation7 + $0x50] sm:$0xff] }
  0x76   :  { %v952_v38 = vpack.c.bf16 %v230_v37, %v229_v36  ;;  %v955_v41 = vpack.c.bf16 %v232_v40, %v231_v39  ;;  %v234_v43 = vld [vmem:[#allocation7 + $0x58] sm:$0xff]  ;;  %v235_v45 = vld [vmem:[#allocation7 + $0x60] sm:$0xff]  ;;  %v236_v46 = vld [vmem:[#allocation7 + $0x68] sm:$0xff] }
  0x77   :  { %947 = vmatpush3.bf16.msra.mxu1 %v946_v32  ;;  %v958_v44 = vpack.c.bf16 %v234_v43, %v233_v42  ;;  %v961_v47 = vpack.c.bf16 %v236_v46, %v235_v45  ;;  %v237_v48 = vld [vmem:[#allocation7 + $0x70] sm:$0xff]  ;;  %v238_v49 = vld [vmem:[#allocation7 + $0x78] sm:$0xff]  ;;  %v326_v51 = vld [vmem:[#allocation8] sm:$0xff] }
  0x78   :  { %926 = vmatpush3.bf16.msra.mxu0 %v925_v12  ;;  %948 = vmatprep.subr.bf16.mxu1 %v1232_v0  ;;  %v964_v50 = vpack.c.bf16 %v238_v49, %v237_v48  ;;  %v327_v52 = vld [vmem:[#allocation8 + $0x8] sm:$0xff]  ;;  %v653_v54 = vld [vmem:[%s1462_s2] ss:$0 sm:$0xff]  ;;  %v328_v6 = vld [vmem:[#allocation8 + $0x10] sm:$0xff] }
  0x79   :  { %927 = vmatprep.subr.bf16.mxu0 %v1232_v0  ;;  %v967_v53 = vpack.c.bf16 %v327_v52, %v326_v51  ;;  %v329_v7 = vld [vmem:[#allocation8 + $0x18] sm:$0xff]  ;;  %v330_v9 = vld [vmem:[#allocation8 + $0x20] sm:$0xff]  ;;  %v331_v10 = vld [vmem:[#allocation8 + $0x28] sm:$0xff] }
  0x7a   :  { %v970_v8 = vpack.c.bf16 %v329_v7, %v328_v6  ;;  %v973_v11 = vpack.c.bf16 %v331_v10, %v330_v9  ;;  %v332_v12 = vld [vmem:[#allocation8 + $0x30] sm:$0xff]  ;;  %v333_v13 = vld [vmem:[#allocation8 + $0x38] sm:$0xff]  ;;  %v334_v15 = vld [vmem:[#allocation8 + $0x40] sm:$0xff] }
  0x7b   :  { %950 = vmatpush3.bf16.msra.mxu1 %v949_v35  ;;  %v976_v14 = vpack.c.bf16 %v333_v13, %v332_v12  ;;  %v336_v18 = vld [vmem:[#allocation8 + $0x50] sm:$0xff]  ;;  %v338_v21 = vld [vmem:[#allocation8 + $0x60] sm:$0xff]  ;;  %v654_v30 = vld [vmem:[%s1464_s4] ss:$0 sm:$0xff] }
  0x7c   :  { %929 = vmatpush3.bf16.msra.mxu0 %v928_v16  ;;  %951 = vmatprep.subr.bf16.mxu1 %v1232_v0  ;;  %v335_v16 = vld [vmem:[#allocation8 + $0x48] sm:$0xff]  ;;  %v340_v24 = vld [vmem:[#allocation8 + $0x70] sm:$0xff]  ;;  %v429_v27 = vld [vmem:[#allocation10] sm:$0xff] }
  0x7d   :  { %930 = vmatprep.subr.bf16.mxu0 %v1232_v0  ;;  %v979_v17 = vpack.c.bf16 %v335_v16, %v334_v15  ;;  %v432_v45 = vld [vmem:[#allocation10 + $0x18] sm:$0xff]  ;;  %v434_v48 = vld [vmem:[#allocation10 + $0x28] sm:$0xff] }
  0x7e   :  { %v436_v51 = vld [vmem:[#allocation10 + $0x38] sm:$0xff] }
  0x7f   :  { %953 = vmatpush3.bf16.msra.mxu1 %v952_v38 }
  0x80   :  { %932 = vmatpush3.bf16.msra.mxu0 %v931_v19  ;;  %954 = vmatprep.subr.bf16.mxu1 %v1232_v0  ;;  %v337_v19 = vld [vmem:[#allocation8 + $0x58] sm:$0xff] }
  0x81   :  { %933 = vmatprep.subr.bf16.mxu0 %v1232_v0  ;;  %v982_v20 = vpack.c.bf16 %v337_v19, %v336_v18  ;;  %v534_v19 = vld [vmem:[#allocation11 + $0x10] sm:$0xff] }
  0x83   :  { %956 = vmatpush3.bf16.msra.mxu1 %v955_v41 }
  0x84   :  { %935 = vmatpush3.bf16.msra.mxu0 %v934_v22  ;;  %957 = vmatprep.subr.bf16.mxu1 %v1232_v0  ;;  %v339_v22 = vld [vmem:[#allocation8 + $0x68] sm:$0xff] }
  0x85   :  { %936 = vmatprep.subr.bf16.mxu0 %v1232_v0  ;;  %v985_v23 = vpack.c.bf16 %v339_v22, %v338_v21  ;;  %v536_v22 = vld [vmem:[#allocation11 + $0x20] sm:$0xff] }
  0x87   :  { %959 = vmatpush3.bf16.msra.mxu1 %v958_v44  ;;  %v431_v44 = vld [vmem:[#allocation10 + $0x10] sm:$0xff] }
  0x88   :  { %938 = vmatpush3.bf16.msra.mxu0 %v937_v25  ;;  %960 = vmatprep.subr.bf16.mxu1 %v1232_v0  ;;  %v341_v25 = vld [vmem:[#allocation8 + $0x78] sm:$0xff]  ;;  %v994_v46 = vpack.c.bf16 %v432_v45, %v431_v44 }
  0x89   :  { %939 = vmatprep.subr.bf16.mxu0 %v1232_v0  ;;  %v988_v26 = vpack.c.bf16 %v341_v25, %v340_v24  ;;  %v538_v25 = vld [vmem:[#allocation11 + $0x30] sm:$0xff] }
  0x8b   :  { %962 = vmatpush3.bf16.msra.mxu1 %v961_v47  ;;  %v433_v47 = vld [vmem:[#allocation10 + $0x20] sm:$0xff] }
  0x8c   :  { %941 = vmatpush3.bf16.msra.mxu0 %v940_v28  ;;  %963 = vmatprep.subr.bf16.mxu1 %v1232_v0  ;;  %v430_v28 = vld [vmem:[#allocation10 + $0x8] sm:$0xff]  ;;  %v997_v49 = vpack.c.bf16 %v434_v48, %v433_v47 }
  0x8d   :  { %966 = vmatprep.subr.bf16.mxu0 %v1232_v0 }
  0x8f   :  { %776 = vmatmul.mubr.f32.vlgmr.msra.gmra.mrb[0].mxu0 %v119_v29  ;;  %965 = vmatpush3.bf16.msra.mxu1 %v964_v50  ;;  %v435_v50 = vld [vmem:[#allocation10 + $0x30] sm:$0xff] }
  0x90   :  { %845 = vmatprep.mubr.msk.f32.mxu0 %vm1233_vm0, %v1234_v1  ;;  %990 = vmatprep.subr.bf16.mxu1 %v1232_v0  ;;  %v1000_v52 = vpack.c.bf16 %v436_v51, %v435_v50 }
  0x91   :  { %968 = vmatpush3.bf16.msra.mxu0 %v967_v53  ;;  %v437_v53 = vld [vmem:[#allocation10 + $0x40] sm:$0xff] }
  0x92   :  { %969 = vmatprep.subr.bf16.mxu0 %v1232_v0 }
  0x95   :  { %971 = vmatpush3.bf16.msra.mxu0 %v970_v8 }
  0x96   :  { %972 = vmatprep.subr.bf16.mxu0 %v1232_v0 }
  0x99   :  { %974 = vmatpush3.bf16.msra.mxu0 %v973_v11 }
  0x9a   :  { %975 = vmatprep.subr.bf16.mxu0 %v1232_v0 }
  0x9d   :  { %977 = vmatpush3.bf16.msra.mxu0 %v976_v14 }
  0x9e   :  { %978 = vmatprep.subr.bf16.mxu0 %v1232_v0 }
  0xa1   :  { %980 = vmatpush3.bf16.msra.mxu0 %v979_v17 }
  0xa2   :  { %981 = vmatprep.subr.bf16.mxu0 %v1232_v0 }
  0xa5   :  { %983 = vmatpush3.bf16.msra.mxu0 %v982_v20  ;;  %v535_v20 = vld [vmem:[#allocation11 + $0x18] sm:$0xff] }
  0xa6   :  { %984 = vmatprep.subr.bf16.mxu0 %v1232_v0  ;;  %v1018_v21 = vpack.c.bf16 %v535_v20, %v534_v19 }
  0xa9   :  { %986 = vmatpush3.bf16.msra.mxu0 %v985_v23  ;;  %v537_v23 = vld [vmem:[#allocation11 + $0x28] sm:$0xff] }
  0xaa   :  { %987 = vmatprep.subr.bf16.mxu0 %v1232_v0  ;;  %v1021_v24 = vpack.c.bf16 %v537_v23, %v536_v22 }
  0xad   :  { %989 = vmatpush3.bf16.msra.mxu0 %v988_v26  ;;  %v539_v26 = vld [vmem:[#allocation11 + $0x38] sm:$0xff] }
  0xae   :  { %1014 = vmatprep.subr.bf16.mxu0 %v1232_v0 }
 0x162   :  { %v209_v55 = vpop.f32.mrb[0].mxu0 }
 0x163   :  { %v210_v56 = vadd.f32 %v653_v54, %v209_v55  ;;  %v777_v57 = vpop.f32.mrb[1].mxu0  ;;  %v439_v55 = vld [vmem:[#allocation10 + $0x50] sm:$0xff] }
 0x165   :  { %v214_v58 = vmul.f32 %v210_v56, %v210_v56  ;;  %v213_v2 = vmul.f32 0.5, %v210_v56 }
 0x167   :  { %v215_v59 = vmul.f32 %v214_v58, %v210_v56  ;;  %v441_v58 = vld [vmem:[#allocation10 + $0x60] sm:$0xff] }
 0x169   :  { %v216_v60 = vmul.f32 0.044715, %v215_v59  ;;  %v442_v59 = vld [vmem:[#allocation10 + $0x68] sm:$0xff] }
 0x16b   :  { %v217_v61 = vadd.f32 %v216_v60, %v210_v56  ;;  %v440_v56 = vld [vmem:[#allocation10 + $0x58] sm:$0xff]  ;;  %v1009_v60 = vpack.c.bf16 %v442_v59, %v441_v58 }
 0x16c   :  { %v1006_v57 = vpack.c.bf16 %v440_v56, %v439_v55 }
 0x16d   :  { %v218_v62 = vmul.f32 0.7978846, %v217_v61  ;;  %v443_v61 = vld [vmem:[#allocation10 + $0x70] sm:$0xff] }
 0x16f   :  { %1050 = vtanh.f32 %v218_v62  ;;  %v444_v62 = vld [vmem:[#allocation10 + $0x78] sm:$0xff] }
 0x179   :  { %v1051_v63 = vpop.eup %1050 }
 0x17a   :  { %v220_v3 = vadd.f32 1.0, %v1051_v63  ;;  %v1012_v63 = vpack.c.bf16 %v444_v62, %v443_v61 }
 0x17c   :  { %v221_v4 = vmul.f32 %v220_v3, %v213_v2  ;;  %v532_v2 = vld [vmem:[#allocation11] sm:$0xff]  ;;  %v533_v3 = vld [vmem:[#allocation11 + $0x8] sm:$0xff] }
 0x17e   :  { %v222_v5 = vadd.f32 %v221_v4, %v119_v29  ;;  %v991_v29 = vpack.c.bf16 %v430_v28, %v429_v27  ;;  %v1015_v4 = vpack.c.bf16 %v533_v3, %v532_v2  ;;  %v1024_v27 = vpack.c.bf16 %v539_v26, %v538_v25  ;;  %v540_v28 = vld [vmem:[#allocation11 + $0x40] sm:$0xff] }
 0x180   :  { %811 = vmatmul.mubr.f32.vlgmr.msra.gmra.mrb[0].mxu1 %v222_v5 }
 0x181   :  { %880 = vmatprep.mubr.msk.f32.mxu1 %vm1233_vm0, %v1234_v1  ;;  %992 = vmatpush3.bf16.msra.mxu1 %v991_v29  ;;  %v541_v29 = vld [vmem:[#allocation11 + $0x48] sm:$0xff] }
 0x182   :  { %993 = vmatprep.subr.bf16.mxu1 %v1232_v0 }
 0x185   :  { %995 = vmatpush3.bf16.msra.mxu1 %v994_v46 }
 0x186   :  { %996 = vmatprep.subr.bf16.mxu1 %v1232_v0 }
 0x189   :  { %998 = vmatpush3.bf16.msra.mxu1 %v997_v49 }
 0x18a   :  { %999 = vmatprep.subr.bf16.mxu1 %v1232_v0 }
 0x18d   :  { %1001 = vmatpush3.bf16.msra.mxu1 %v1000_v52 }
 0x18e   :  { %1002 = vmatprep.subr.bf16.mxu1 %v1232_v0 }
 0x253   :  { %v312_v31 = vpop.f32.mrb[0].mxu1 }
 0x254   :  { %v313_v32 = vadd.f32 %v654_v30, %v312_v31  ;;  %v812_v33 = vpop.f32.mrb[1].mxu1  ;;  %v1027_v30 = vpack.c.bf16 %v541_v29, %v540_v28  ;;  %v542_v31 = vld [vmem:[#allocation11 + $0x50] sm:$0xff] }
 0x256   :  { %v317_v34 = vmul.f32 %v313_v32, %v313_v32  ;;  %v316_v40 = vmul.f32 0.5, %v313_v32 }
 0x258   :  { %v318_v35 = vmul.f32 %v317_v34, %v313_v32  ;;  %v544_v34 = vld [vmem:[#allocation11 + $0x60] sm:$0xff] }
 0x25a   :  { %v319_v36 = vmul.f32 0.044715, %v318_v35  ;;  %v545_v35 = vld [vmem:[#allocation11 + $0x68] sm:$0xff] }
 0x25c   :  { %v320_v37 = vadd.f32 %v319_v36, %v313_v32  ;;  %v543_v32 = vld [vmem:[#allocation11 + $0x58] sm:$0xff]  ;;  %v1033_v36 = vpack.c.bf16 %v545_v35, %v544_v34 }
 0x25d   :  { %v1030_v33 = vpack.c.bf16 %v543_v32, %v542_v31 }
 0x25e   :  { %v321_v38 = vmul.f32 0.7978846, %v320_v37  ;;  %v546_v37 = vld [vmem:[#allocation11 + $0x70] sm:$0xff] }
 0x260   :  { %1052 = vtanh.f32 %v321_v38  ;;  %v547_v38 = vld [vmem:[#allocation11 + $0x78] sm:$0xff] }
 0x26a   :  { %v1053_v39 = vpop.eup %1052 }
 0x26b   :  { %v323_v41 = vadd.f32 1.0, %v1053_v39  ;;  %v1036_v39 = vpack.c.bf16 %v547_v38, %v546_v37 }
 0x26d   :  { %v324_v42 = vmul.f32 %v323_v41, %v316_v40  ;;  %v656_v40 = vld [vmem:[%s1468_s8] ss:$0 sm:$0xff]  ;;  %s1235_s8 = smov [#allocation13]  }
 0x26e   :  { %s641_s5 = sshll.u32 %s1235_s8, 4  ;;  %s642_s5 = int_to_ptr.vmem [resolvable:$true] %s641_s5 }
 0x26f   :  { %v325_v43 = vadd.f32 %v324_v42, %v222_v5  ;;  %v655_v5 = vld [vmem:[%s1466_s6] ss:$0 sm:$0xff]  ;;  %s1192_s13 = scalar_lea.vmem %s642_s5, 128  ;;  %p1197_p7 = scmp.lt.s32.totalorder %s642_s5, %s642_s5 }
 0x270   :  { %p1193_p6 = scmp.ne.s32.totalorder %s642_s5, %s1192_s13  ;;  %p1198_p8 = scmp.lt.s32.totalorder %s1192_s13, %s1192_s13 }
 0x271   :  { %846 = vmatmul.mubr.f32.vlgmr.msra.gmra.mrb[2].mxu0 %v325_v43 }
 0x272   :  { %915 = vmatprep.mubr.msk.f32.mxu0 %vm1233_vm0, %v1234_v1  ;;  %v438_v1 = vld [vmem:[#allocation10 + $0x48] sm:$0xff]  ;;  %1016 = vmatpush3.bf16.msra.mxu0 %v1015_v4  ;;  %p1199_p9 = por %p1198_p8, %p1197_p7 }
 0x273   :  { %v1003_v54 = vpack.c.bf16 %v438_v1, %v437_v53  ;;  %1017 = vmatprep.subr.bf16.mxu0 %v1232_v0 }
 0x274   :  { %p1200_p10 = pnand %p1199_p9, %p1193_p6 }
 0x275   :  { %1004 = vmatpush3.bf16.msra.mxu1 %v1003_v54 }
 0x276   :  { %1005 = vmatprep.subr.bf16.mxu1 %v1232_v0  ;;  %1019 = vmatpush3.bf16.msra.mxu0 %v1018_v21 }
 0x277   :  { %1020 = vmatprep.subr.bf16.mxu0 %v1232_v0 }
 0x279   :  { %1007 = vmatpush3.bf16.msra.mxu1 %v1006_v57 }
 0x27a   :  { %1008 = vmatprep.subr.bf16.mxu1 %v1232_v0  ;;  %1022 = vmatpush3.bf16.msra.mxu0 %v1021_v24 }
 0x27b   :  { %1023 = vmatprep.subr.bf16.mxu0 %v1232_v0 }
 0x27d   :  { %1010 = vmatpush3.bf16.msra.mxu1 %v1009_v60 }
 0x27e   :  { %1011 = vmatprep.subr.bf16.mxu1 %v1232_v0  ;;  %1025 = vmatpush3.bf16.msra.mxu0 %v1024_v27 }
 0x27f   :  { %1026 = vmatprep.subr.bf16.mxu0 %v1232_v0 }
 0x281   :  { %1013 = vmatpush3.bf16.msra.mxu1 %v1012_v63 }
 0x282   :  { %1028 = vmatpush3.bf16.msra.mxu0 %v1027_v30 }
 0x283   :  { %1029 = vmatprep.subr.bf16.mxu0 %v1232_v0 }
 0x286   :  { %1031 = vmatpush3.bf16.msra.mxu0 %v1030_v33 }
 0x287   :  { %1032 = vmatprep.subr.bf16.mxu0 %v1232_v0 }
 0x28a   :  { %1034 = vmatpush3.bf16.msra.mxu0 %v1033_v36 }
 0x28b   :  { %1035 = vmatprep.subr.bf16.mxu0 %v1232_v0  ;;  %v657_v0 = vld [vmem:[%s1470_s10] ss:$0 sm:$0xff] }
 0x28e   :  { %1037 = vmatpush3.bf16.msra.mxu0 %v1036_v39 }
 0x344   :  { %v415_v6 = vpop.f32.mrb[2].mxu0 }
 0x345   :  { %v416_v7 = vadd.f32 %v655_v5, %v415_v6  ;;  %v847_v8 = vpop.f32.mrb[3].mxu0 }
 0x347   :  { %v420_v9 = vmul.f32 %v416_v7, %v416_v7  ;;  %v419_v15 = vmul.f32 0.5, %v416_v7 }
 0x349   :  { %v421_v10 = vmul.f32 %v420_v9, %v416_v7 }
 0x34b   :  { %v422_v11 = vmul.f32 0.044715, %v421_v10 }
 0x34d   :  { %v423_v12 = vadd.f32 %v422_v11, %v416_v7 }
 0x34f   :  { %v424_v13 = vmul.f32 0.7978846, %v423_v12 }
 0x351   :  { %1054 = vtanh.f32 %v424_v13 }
 0x35b   :  { %v1055_v14 = vpop.eup %1054 }
 0x35c   :  { %v426_v16 = vadd.f32 1.0, %v1055_v14 }
 0x35e   :  { %v427_v17 = vmul.f32 %v426_v16, %v419_v15 }
 0x360   :  { %v428_v18 = vadd.f32 %v427_v17, %v325_v43 }
 0x362   :  { %881 = vmatmul.mubr.f32.vlgmr.msra.gmra.mrb[2].mxu1 %v428_v18 }
 0x435   :  { %v518_v41 = vpop.f32.mrb[2].mxu1 }
 0x436   :  { %v519_v42 = vadd.f32 %v656_v40, %v518_v41  ;;  %v882_v43 = vpop.f32.mrb[3].mxu1 }
 0x438   :  { %v523_v44 = vmul.f32 %v519_v42, %v519_v42  ;;  %v522_v50 = vmul.f32 0.5, %v519_v42 }
 0x43a   :  { %v524_v45 = vmul.f32 %v523_v44, %v519_v42 }
 0x43c   :  { %v525_v46 = vmul.f32 0.044715, %v524_v45 }
 0x43e   :  { %v526_v47 = vadd.f32 %v525_v46, %v519_v42 }
 0x440   :  { %v527_v48 = vmul.f32 0.7978846, %v526_v47 }
 0x442   :  { %1056 = vtanh.f32 %v527_v48 }
 0x44c   :  { %v1057_v49 = vpop.eup %1056 }
 0x44d   :  { %v529_v51 = vadd.f32 1.0, %v1057_v49 }
 0x44f   :  { %v530_v52 = vmul.f32 %v529_v51, %v522_v50 }
 0x451   :  { %v531_v53 = vadd.f32 %v530_v52, %v428_v18 }
 0x453   :  { %916 = vmatmul.mubr.f32.vlgmr.msra.gmra.mrb[4].mxu0 %v531_v53 }
 0x526   :  { %v621_v1 = vpop.f32.mrb[4].mxu0 }
 0x527   :  { %v622_v54 = vadd.f32 %v657_v0, %v621_v1  ;;  %v917_v55 = vpop.f32.mrb[5].mxu0 }
 0x529   :  { %v626_v56 = vmul.f32 %v622_v54, %v622_v54  ;;  %v625_v62 = vmul.f32 0.5, %v622_v54 }
 0x52b   :  { %v627_v57 = vmul.f32 %v626_v56, %v622_v54 }
 0x52d   :  { %v628_v58 = vmul.f32 0.044715, %v627_v57 }
 0x52f   :  { %v629_v59 = vadd.f32 %v628_v58, %v622_v54 }
 0x531   :  { %v630_v60 = vmul.f32 0.7978846, %v629_v59 }
 0x533   :  { %1058 = vtanh.f32 %v630_v60 }
 0x53d   :  { %v1059_v61 = vpop.eup %1058 }
 0x53e   :  { %v632_v63 = vadd.f32 1.0, %v1059_v61 }
 0x540   :  { %v633_v2 = vmul.f32 %v632_v63, %v625_v62 }
 0x542   :  { %634 = vst [vmem:[#allocation13] sm:$0xff] %v633_v2 }
 0x543   :  { %1203 = shalt.err (!%p1200_p10)
}
 0x544   :  { %s1204_s21 = scalar_lea.hbm %s1471_s11, 128 }
 0x545   :  { %p1205_p11 = scmp.ne.s32.totalorder %s1471_s11, %s1204_s21  ;;  %p1208_p12 = scmp.lt.u32.totalorder %s1204_s21, %s1471_s11 }
 0x547   :  { %p1210_p13 = pnand %p1208_p12, %p1205_p11 }
 0x549   :  { %1213 = shalt.err (!%p1210_p13)
}
 0x54a   :  { %644 = dma.vmem_to_hbm [thread:$0]  %s642_s5, 128, %s1471_s11, [#allocation4]  }
 0x54b   :  { %1222 = dma.done.wait [#allocation4], 128  }
 0x54c   :  { %1223 = vsyncadd [#allocation4], 4294967168 }
 0x54d   :  { %648 = vsyncpa [#allocation3], 1 }
 0x54e   :  { %649 = vsyncpa [#allocation6], 1 }
 0x54f   :  { %650 = vsyncpa [#allocation9], 1 }
 0x550   :  { %651 = vsyncpa [#allocation12], 1 }
 0x551   :  { %652 = vsyncpa [#allocation4], 1 }

</bundles_post_ra>
